<compile_context>
chip_gen: v6e
topology: v6e:2x2x1
jax: 0.10.0
libtpu: 0.0.40
codegen_flags: <defaults>
</compile_context>

<pallas_src>
import functools
import math

import jax
import jax.numpy as jnp
from jax.experimental import pallas as pl
from jax.experimental.pallas import tpu as pltpu

# The TPU hardware PRNG only lowers on a real TPU backend.  Anywhere else
# (CPU / interpret sandboxes) fall back to external jax.random.normal noise.
_ON_TPU = jax.default_backend() == "tpu"
_USE_TPU_PRNG = (_ON_TPU and hasattr(pltpu, "prng_seed")
                 and hasattr(pltpu, "stateful_normal"))

_BLOCK_BUDGET_BYTES = 4 * 1024 * 1024   # per-step in+out+noise bytes (x2 when
                                        # double-buffered) -- safe on v5e/v6e/v7x
_VMEM_LIMIT_BYTES = 48 * 1024 * 1024    # explicit scoped-VMEM cap (< v7x 64 MiB)
_MIN_GRID_STEPS = 4                     # keep both v7x TensorCores busy on big inputs


# ----------------------------------------------------------------------------
# Tile-size heuristics (byte-budgeted, lane/sublane aligned)
# ----------------------------------------------------------------------------
def _pick_inner_tile(inner, bytes_per_inner):
    """Largest multiple of 128 dividing `inner` whose block fits the budget."""
    if inner % 128 != 0:
        # (8,128) rule: must take the full extent.
        # TODO(synk): if this full-extent block is too large for VMEM the
        # compile will fail rather than degrade gracefully.
        return inner
    t = inner
    while t > 128 and (inner % t != 0 or t * bytes_per_inner > _BLOCK_BUDGET_BYTES):
        t -= 128
    return t


def _pick_outer_tile(outer, bytes_per_row, other_steps, total_bytes,
                     sublane_multiple=1):
    """Largest divisor of `outer` (a multiple of `sublane_multiple`) whose block
    fits the budget; keeps >= _MIN_GRID_STEPS grid steps on large inputs so the
    v7x megacore split has balanced work."""
    if sublane_multiple > 1 and outer % sublane_multiple != 0:
        return outer                      # (8,128) rule: full extent required
    max_rows = max(sublane_multiple, _BLOCK_BUDGET_BYTES // max(1, bytes_per_row))
    if total_bytes > _MIN_GRID_STEPS * _BLOCK_BUDGET_BYTES and other_steps < _MIN_GRID_STEPS:
        want_outer_steps = -(-_MIN_GRID_STEPS // max(1, other_steps))   # ceil div
        max_rows = min(max_rows, max(sublane_multiple, outer // want_outer_steps))
    step = sublane_multiple
    best = step
    t = step
    while t <= outer:
        if outer % t == 0 and t <= max_rows:
            best = t
        t += step
    return best


# ----------------------------------------------------------------------------
# Kernels
# ----------------------------------------------------------------------------
# TODO(synk): when d is not a multiple of the sublane packing, the two stores
# below share a boundary vreg (masked partial stores).  A single blended store
# (iota row-mask + jnp.where) would remove the vst.msk; skipped to keep the
# lowering maximally portable.

def _prng_kernel_3d(d, amount, tile_outer, tile_inner):
    def kernel(seed_ref, x_ref, o_ref):
        # x_ref: (tile_outer, d, tile_inner); o_ref: (tile_outer, d+amount, tile_inner)
        o_ref[:, 0:d, :] = x_ref[...]
        # Fold the grid position into the seed: deterministic, decorrelated,
        # independent of grid scheduling / megacore split.
        pltpu.prng_seed(seed_ref[0], pl.program_id(0), pl.program_id(1))
        z = pltpu.stateful_normal((tile_outer, amount, tile_inner), jnp.float32)
        o_ref[:, d:, :] = z.astype(o_ref.dtype)
    return kernel


def _prng_kernel_2d(d, amount, tile_outer):
    def kernel(seed_ref, x_ref, o_ref):
        # Padded dim lives on the lane axis -> lane-dense stores.
        o_ref[:, 0:d] = x_ref[...]
        pltpu.prng_seed(seed_ref[0], pl.program_id(0))
        z = pltpu.stateful_normal((tile_outer, amount), jnp.float32)
        o_ref[:, d:] = z.astype(o_ref.dtype)
    return kernel


def _concat_kernel_3d(d):
    def kernel(x_ref, p_ref, o_ref):
        o_ref[:, 0:d, :] = x_ref[...]
        o_ref[:, d:, :] = p_ref[...]
    return kernel


def _concat_kernel_2d(d):
    def kernel(x_ref, p_ref, o_ref):
        o_ref[:, 0:d] = x_ref[...]
        o_ref[:, d:] = p_ref[...]
    return kernel


# ----------------------------------------------------------------------------
# Wrapper
# ----------------------------------------------------------------------------
@functools.partial(jax.jit, static_argnames=("dim", "amount"))
def random_pad(x, *, dim, amount, seed):
    """Append `amount` standard-normal entries to `x` along `dim`."""
    ndim = x.ndim
    dim = dim % ndim
    shape = x.shape
    d = shape[dim]
    d_out = d + amount
    outer = int(math.prod(shape[:dim]))
    inner = int(math.prod(shape[dim + 1:]))
    itemsize = jnp.dtype(x.dtype).itemsize
    out_shape_full = shape[:dim] + (d_out,) + shape[dim + 1:]

    def cparams(sem):
        return pltpu.CompilerParams(dimension_semantics=sem,
                                    vmem_limit_bytes=_VMEM_LIMIT_BYTES)

    noise_bytes_per_elem = amount * (4 if _USE_TPU_PRNG else itemsize)

    if inner > 1:
        # Canonical (outer, d, inner) view: padded dim in the middle, the
        # contiguous inner axis on lanes.  Reshape only -- no transpose.
        x3 = x.reshape(outer, d, inner)
        row_cost = (d + d_out) * itemsize + noise_bytes_per_elem   # per inner elem, per outer row
        tile_inner = _pick_inner_tile(inner, row_cost)
        inner_steps = inner // tile_inner
        total_bytes = row_cost * inner * outer
        tile_outer = _pick_outer_tile(outer, row_cost * tile_inner,
                                      inner_steps, total_bytes)
        grid = (outer // tile_outer, inner_steps)
        out_struct = jax.ShapeDtypeStruct((outer, d_out, inner), x.dtype)

        if _USE_TPU_PRNG:
            seed_arr = jnp.asarray(seed, dtype=jnp.int32).reshape((1,))
            out3 = pl.pallas_call(
                _prng_kernel_3d(d, amount, tile_outer, tile_inner),
                out_shape=out_struct,
                grid_spec=pltpu.PrefetchScalarGridSpec(
                    num_scalar_prefetch=1,
                    grid=grid,
                    in_specs=[pl.BlockSpec((tile_outer, d, tile_inner),
                                           lambda o, i, s: (o, 0, i))],
                    out_specs=pl.BlockSpec((tile_outer, d_out, tile_inner),
                                           lambda o, i, s: (o, 0, i))),
                compiler_params=cparams(("parallel", "parallel")),
                cost_estimate=pl.CostEstimate(
                    flops=0,
                    transcendentals=outer * amount * inner,
                    bytes_accessed=(d + d_out) * outer * inner * itemsize),
            )(seed_arr, x3)
        else:
            pad3 = jax.random.normal(jax.random.PRNGKey(seed),
                                     (outer, amount, inner),
                                     jnp.float32).astype(x.dtype)
            out3 = pl.pallas_call(
                _concat_kernel_3d(d),
                out_shape=out_struct,
                grid=grid,
                in_specs=[pl.BlockSpec((tile_outer, d, tile_inner),
                                       lambda o, i: (o, 0, i)),
                          pl.BlockSpec((tile_outer, amount, tile_inner),
                                       lambda o, i: (o, 0, i))],
                out_specs=pl.BlockSpec((tile_outer, d_out, tile_inner),
                                       lambda o, i: (o, 0, i)),
                compiler_params=cparams(("parallel", "parallel")),
                cost_estimate=pl.CostEstimate(
                    flops=0, transcendentals=0,
                    bytes_accessed=(d + d_out + amount) * outer * inner * itemsize),
            )(x3, pad3)
        return out3.reshape(out_shape_full)

    # inner == 1 (e.g. padding the last axis): 2-D (outer, d) view so the
    # padded dim lands on the 128-wide lane axis (lane-dense stores).
    x2 = x.reshape(outer, d)
    row_cost = (d + d_out) * itemsize + noise_bytes_per_elem
    total_bytes = row_cost * outer
    tile_outer = _pick_outer_tile(outer, row_cost, 1, total_bytes,
                                  sublane_multiple=8)
    grid = (outer // tile_outer,)
    out_struct = jax.ShapeDtypeStruct((outer, d_out), x.dtype)

    if _USE_TPU_PRNG:
        seed_arr = jnp.asarray(seed, dtype=jnp.int32).reshape((1,))
        out2 = pl.pallas_call(
            _prng_kernel_2d(d, amount, tile_outer),
            out_shape=out_struct,
            grid_spec=pltpu.PrefetchScalarGridSpec(
                num_scalar_prefetch=1,
                grid=grid,
                in_specs=[pl.BlockSpec((tile_outer, d), lambda o, s: (o, 0))],
                out_specs=pl.BlockSpec((tile_outer, d_out), lambda o, s: (o, 0))),
            compiler_params=cparams(("parallel",)),
            cost_estimate=pl.CostEstimate(
                flops=0, transcendentals=outer * amount,
                bytes_accessed=(d + d_out) * outer * itemsize),
        )(seed_arr, x2)
    else:
        pad2 = jax.random.normal(jax.random.PRNGKey(seed), (outer, amount),
                                 jnp.float32).astype(x.dtype)
        out2 = pl.pallas_call(
            _concat_kernel_2d(d),
            out_shape=out_struct,
            grid=grid,
            in_specs=[pl.BlockSpec((tile_outer, d), lambda o: (o, 0)),
                      pl.BlockSpec((tile_outer, amount), lambda o: (o, 0))],
            out_specs=pl.BlockSpec((tile_outer, d_out), lambda o: (o, 0)),
            compiler_params=cparams(("parallel",)),
            cost_estimate=pl.CostEstimate(
                flops=0, transcendentals=0,
                bytes_accessed=(d + d_out + amount) * outer * itemsize),
        )(x2, pad2)
    return out2.reshape(out_shape_full)


# TODO(synk): RandomPad.inverse (padding removal) is not implemented; only the
# forward pass was requested.
# TODO(synk): the optional HBM->HBM async-copy of the copy region (noise-only
# kernel body) is not implemented; the fused copy+noise kernel is already
# HBM-bandwidth bound.

if __name__ == "__main__":
    key = jax.random.PRNGKey(0)
    N, C, H, W = 2, 4, 16, 16
    dim, amount = 1, 4                    # pad the channel dimension by 4
    x = jax.random.normal(key, (N, C, H, W), dtype=jnp.float32)

    out = random_pad(x, dim=dim, amount=amount, seed=1234)
    out = jax.block_until_ready(out)

    # Shape: original extended by `amount` along `dim`.
    assert out.shape == (N, C + amount, H, W), out.shape
    # The leading slice along `dim` must be an exact copy of the input.
    assert bool(jnp.array_equal(out[:, :C], x))
    # The appended slice is i.i.d. standard-normal noise: finite, ~N(0, 1).
    pad = out[:, C:]
    assert bool(jnp.all(jnp.isfinite(pad)))
    pad_mean = float(jnp.mean(pad))
    pad_std = float(jnp.std(pad))
    assert abs(pad_mean) < 0.2, pad_mean
    assert 0.75 < pad_std < 1.25, pad_std

    # Also exercise the last-dim (lane-dense) path.
    out_last = random_pad(x, dim=3, amount=amount, seed=7)
    out_last = jax.block_until_ready(out_last)
    assert out_last.shape == (N, C, H, W + amount), out_last.shape
    assert bool(jnp.array_equal(out_last[..., :W], x))
    assert bool(jnp.all(jnp.isfinite(out_last[..., W:])))

    print("KERNEL_OK")
</pallas_src>

<mosaic_0001>
module attributes {stable_mosaic.version = 11 : i64} {
  func.func @kernel(%arg0: i32, %arg1: i32, %arg2: memref<2x4x256xf32, #tpu.memory_space<vmem>>, %arg3: memref<2x4x256xf32, #tpu.memory_space<vmem>>, %arg4: memref<2x8x256xf32, #tpu.memory_space<vmem>>) attributes {dimension_semantics = [#tpu.dimension_semantics<parallel>, #tpu.dimension_semantics<parallel>], iteration_bounds = array<i64: 1, 1>, scalar_prefetch = 0 : i64, scratch_operands = 0 : i64, tpu.core_type = #tpu.core_type<tc>, window_params = [{transform_indices = @transform_0, window_bounds = array<i64: 2, 4, 256>}, {transform_indices = @transform_1, window_bounds = array<i64: 2, 4, 256>}, {transform_indices = @transform_2, window_bounds = array<i64: 2, 8, 256>}]} {
    %c0 = arith.constant 0 : index
    %c0_0 = arith.constant 0 : index
    %c0_1 = arith.constant 0 : index
    %0 = vector.load %arg2[%c0, %c0_0, %c0_1] : memref<2x4x256xf32, #tpu.memory_space<vmem>>, vector<2x4x256xf32>
    %c0_2 = arith.constant 0 : index
    %c0_3 = arith.constant 0 : index
    %c0_4 = arith.constant 0 : index
    %1 = vector.load %arg4[%c0_2, %c0_3, %c0_4] : memref<2x8x256xf32, #tpu.memory_space<vmem>>, vector<2x4x256xf32>
    tpu.vector_store %arg4[%c0_2, %c0_3, %c0_4], %0 {strides = array<i32>} : memref<2x8x256xf32, #tpu.memory_space<vmem>>, vector<2x4x256xf32>,
    %c0_5 = arith.constant 0 : index
    %c0_6 = arith.constant 0 : index
    %c0_7 = arith.constant 0 : index
    %2 = vector.load %arg3[%c0_5, %c0_6, %c0_7] : memref<2x4x256xf32, #tpu.memory_space<vmem>>, vector<2x4x256xf32>
    %c0_8 = arith.constant 0 : index
    %c4 = arith.constant 4 : index
    %c0_9 = arith.constant 0 : index
    %3 = vector.load %arg4[%c0_8, %c4, %c0_9] : memref<2x8x256xf32, #tpu.memory_space<vmem>>, vector<2x4x256xf32>
    tpu.vector_store %arg4[%c0_8, %c4, %c0_9], %2 {strides = array<i32>} : memref<2x8x256xf32, #tpu.memory_space<vmem>>, vector<2x4x256xf32>,
    return
  }
  func.func @transform_0(%arg0: i32, %arg1: i32) -> (i32, i32, i32) {
    %c0_i32 = arith.constant 0 : i32
    %c0_i32_0 = arith.constant 0 : i32
    return %arg0, %c0_i32, %arg1 : i32, i32, i32
  }
  func.func @transform_1(%arg0: i32, %arg1: i32) -> (i32, i32, i32) {
    %c0_i32 = arith.constant 0 : i32
    %c0_i32_0 = arith.constant 0 : i32
    return %arg0, %c0_i32, %arg1 : i32, i32, i32
  }
  func.func @transform_2(%arg0: i32, %arg1: i32) -> (i32, i32, i32) {
    %c0_i32 = arith.constant 0 : i32
    %c0_i32_0 = arith.constant 0 : i32
    return %arg0, %c0_i32, %arg1 : i32, i32, i32
  }
}

</mosaic_0001>

<bundles_post_ra>
// kernel: random_pad.1
= control target key start
LH: loop header
LB: loop body
LE: loop exit
PB: predicated region body
PF: predicated region fallthrough
CT: control target
= control target key end

     0   :  { %s94_s0 = inlined_call_operand.vmem [shape: f32[2,4,256], index: 0, kind: input, shape index: {}]   ;;  %s95_s2 = inlined_call_operand.vmem [shape: f32[2,8,256], index: 2, kind: output, shape index: {}]   ;;  %s96_s1 = inlined_call_operand.vmem [shape: f32[2,4,256], index: 1, kind: input, shape index: {}]  }
   0x1   :  { %v11_v0 = vld [vmem:[%s94_s0] sm:$0xff]  ;;  %v12_v1 = vld [vmem:[%s94_s0 + $0x8] sm:$0xff] }
   0x2   :  { %v23_v2 = vld [vmem:[%s96_s1] sm:$0xff]  ;;  %19 = vst [vmem:[%s95_s2] sm:$0xf] %v11_v0  ;;  %v15_v3 = vcombine.high %v11_v0, %v11_v0  ;;  %21 = vst [vmem:[%s95_s2 + $0x10] sm:$0xf] %v12_v1  ;;  %v16_v4 = vcombine.high %v12_v1, %v12_v1  ;;  %v24_v6 = vld [vmem:[%s96_s1 + $0x8] sm:$0xff] }
   0x3   :  { %v27_v5 = vcombine.low %v23_v2, %v23_v2  ;;  %32 = vst [vmem:[%s95_s2 + $0x8] sm:$0xf0] %v23_v2  ;;  %v28_v7 = vcombine.low %v24_v6, %v24_v6  ;;  %34 = vst [vmem:[%s95_s2 + $0x18] sm:$0xf0] %v24_v6 }
   0x4   :  { %20 = vst [vmem:[%s95_s2 + $0x8] sm:$0xf] %v15_v3  ;;  %22 = vst [vmem:[%s95_s2 + $0x18] sm:$0xf] %v16_v4 }
   0x5   :  { %31 = vst [vmem:[%s95_s2] sm:$0xf0] %v27_v5  ;;  %33 = vst [vmem:[%s95_s2 + $0x10] sm:$0xf0] %v28_v7 }

</bundles_post_ra>
